<compile_context>
chip_gen: v6e
topology: v6e:2x2x1
jax: 0.10.0
libtpu: 0.0.40
codegen_flags: <defaults>
</compile_context>

<pallas_src>
import functools

import numpy as np
import jax
import jax.numpy as jnp
from jax.experimental import pallas as pl
from jax.experimental.pallas import tpu as pltpu


def _sigmoid(v):
    # nn.Sigmoid via a single EUP transcendental: sigmoid(v) = 0.5*tanh(0.5*v)+0.5
    return 0.5 * jnp.tanh(0.5 * v) + 0.5


def rate_rnn_kernel(x_ref, h0_ref, noise_ref, w_rec_ref, w_out_ref,
                    out_ref, hid_ref, *,
                    seq_len, batch, in_dim, hidden_dim, alpha):
    """Single-invocation forward pass (everything VMEM / register resident).

    x_ref     : (S*B, D)   time-major flattened input
    h0_ref    : (B, H)     initial hidden state (layer dim squeezed)
    noise_ref : (S*B, 2H)  time-major noise, [:, :H] first update, [:, H:] second
                           (already scaled by 0.01)
    w_rec_ref : (D+H, H)   [W_ih^T ; W_hh^T] packed
    w_out_ref : (H+1, O)   [W_ho^T ; b_ho] packed
    out_ref   : (S*B, O)   softmax probabilities (time-major slab)
    hid_ref   : (S*B, H)   hidden states h_tp1 across time (time-major slab)
    """
    beta = 1.0 - alpha

    # Unpack + fold alpha into the weights ONCE (off the serial chain).
    w_rec = w_rec_ref[...]
    wih_a = alpha * w_rec[:in_dim, :]                 # (D, H)
    whh_a = alpha * w_rec[in_dim:, :]                 # (H, H)
    w_out = w_out_ref[...]
    who = w_out[:hidden_dim, :]                       # (H, O)
    bho = w_out[hidden_dim:hidden_dim + 1, :]         # (1, O)

    noise = noise_ref[...]
    n1 = noise[:, :hidden_dim]
    n2 = noise[:, hidden_dim:]

    # Hoisted input projection: one MXU op, fully off the serial chain,
    # kept as a register value (S*B, H); alpha already folded in.
    xw = jnp.dot(x_ref[...], wih_a, preferred_element_type=jnp.float32)

    h = h0_ref[...]
    # Carry r = sigmoid(h) @ (alpha*W_hh): exactly one recurrent matmul per step.
    r = jnp.dot(_sigmoid(h), whh_a, preferred_element_type=jnp.float32)

    hidden_rows = []
    logit_rows = []
    for t in range(seq_len):                          # static, fully unrolled
        lo = t * batch
        hi = lo + batch
        # h_ = (1-a)*h + a*(sigmoid(h)@Whh + x_t@Wih) + noise1   (alpha pre-folded)
        h_new = beta * h + (r + xw[lo:hi, :]) + n1[lo:hi, :]
        r_new = jnp.dot(_sigmoid(h_new), whh_a, preferred_element_type=jnp.float32)
        # h_tp1 = (1-a)*h_ + a*sigmoid(h_)@Whh + noise2
        h_tp1 = beta * h_new + r_new + n2[lo:hi, :]
        hidden_rows.append(h_tp1)
        # Output projection is pure feed-forward work; interleaving it per step
        # lets the scheduler hide it under serial-chain stalls.
        logit_rows.append(
            jnp.dot(_sigmoid(h_tp1), who, preferred_element_type=jnp.float32) + bho)
        h, r = h_new, r_new

    # One full lane-dense store for the hidden slab.
    hid_ref[...] = jnp.concatenate(hidden_rows, axis=0)

    # Epilogue: only the row-wise softmax normalisation remains.
    logits = jnp.concatenate(logit_rows, axis=0)      # (S*B, O)
    m = jnp.max(logits, axis=-1, keepdims=True)
    e = jnp.exp(logits - m)
    # Exact normalisation (approx reciprocal previously broke the tolerance).
    out_ref[...] = e / jnp.sum(e, axis=-1, keepdims=True)


@functools.partial(jax.jit, static_argnums=(4, 5))
def rate_rnn_forward(x, h0, noise, params, tau, dt):
    """Matches RateRNN_v2_tp1.forward(x, h) -> (out, hidden).

    x      : (B, S, D)
    h0     : (B, 1, H)       (BatchN, LayerN, HiddenN)
    noise  : (S*B, 2H)       time-major, pre-scaled (*0.01); [:, :H] first
                             update, [:, H:] second update (stands in for the
                             in-loop torch.randn draws).
    returns out (B, S, O), hidden (B, S, H)
    """
    B, S, D = x.shape
    H = params["whh"].shape[0]
    O = params["who"].shape[1]
    alpha = float(dt) / float(tau)

    x_tm = jnp.transpose(x, (1, 0, 2)).reshape(S * B, D)              # time-major slab
    h0_2d = h0.reshape(B, H)
    w_rec = jnp.concatenate([params["wih"], params["whh"]], axis=0)   # (D+H, H)
    w_out = jnp.concatenate([params["who"], params["bho"]], axis=0)   # (H+1, O)

    kernel = functools.partial(rate_rnn_kernel, seq_len=S, batch=B,
                               in_dim=D, hidden_dim=H, alpha=alpha)

    flops = 2 * S * B * H * (D + 2 * H + O)
    transcendentals = S * B * (3 * H + O)
    bytes_accessed = 4 * (x_tm.size + h0_2d.size + noise.size +
                          w_rec.size + w_out.size + S * B * (H + O))

    out_2d, hid_2d = pl.pallas_call(
        kernel,
        out_shape=(jax.ShapeDtypeStruct((S * B, O), jnp.float32),
                   jax.ShapeDtypeStruct((S * B, H), jnp.float32)),
        in_specs=[pl.BlockSpec(memory_space=pltpu.MemorySpace.VMEM)] * 5,
        out_specs=(pl.BlockSpec(memory_space=pltpu.MemorySpace.VMEM),
                   pl.BlockSpec(memory_space=pltpu.MemorySpace.VMEM)),
        cost_estimate=pl.CostEstimate(flops=flops,
                                      transcendentals=transcendentals,
                                      bytes_accessed=bytes_accessed),
    )(x_tm, h0_2d, noise, w_rec, w_out)

    out = out_2d.reshape(S, B, O).transpose(1, 0, 2)      # (B, S, O)
    hidden = hid_2d.reshape(S, B, H).transpose(1, 0, 2)   # (B, S, H)
    return out, hidden


def reference(x, h0, noise, p, tau, dt):
    """Pure-JAX reference mirroring the PyTorch forward."""
    B, S, D = x.shape
    H = p["whh"].shape[0]
    alpha = float(dt) / float(tau)
    sig = jax.nn.sigmoid
    noise3 = noise.reshape(S, B, 2 * H)
    h = h0.reshape(B, H)
    hid_list = []
    for t in range(S):
        n1 = noise3[t, :, :H]
        n2 = noise3[t, :, H:]
        h_ = ((1.0 - alpha) * h
              + alpha * (sig(h) @ p["whh"] + x[:, t, :] @ p["wih"])
              + n1)
        h_tp1 = (1.0 - alpha) * h_ + alpha * (sig(h_) @ p["whh"]) + n2
        h = h_
        hid_list.append(h_tp1)
    hidden = jnp.stack(hid_list, axis=1)                   # (B, S, H)
    logits = sig(hidden) @ p["who"] + p["bho"]
    return jax.nn.softmax(logits, axis=2), hidden


if __name__ == "__main__":
    # Small shapes consistent with the module: x (B, SeqN, input_dim), h (B, 1, hidden)
    B, S, D, H, O = 2, 8, 16, 32, 8
    tau, dt = 10.0, 1.0

    key = jax.random.PRNGKey(0)
    ks = jax.random.split(key, 7)

    def unif(k, shape, fan_in):
        bound = 1.0 / np.sqrt(fan_in)
        return jax.random.uniform(k, shape, jnp.float32, -bound, bound)

    # Weights stored (in, out), i.e. transposed relative to torch's (out, in).
    params = {
        "wih": unif(ks[0], (D, H), D),   # linear_ih (bias=None)
        "whh": unif(ks[1], (H, H), H),   # linear_hh (bias=None)
        "who": unif(ks[2], (H, O), H),   # linear_ho weight
        "bho": unif(ks[3], (1, O), H),   # linear_ho bias
    }

    x = jax.random.normal(ks[4], (B, S, D), jnp.float32)
    h0 = jax.random.normal(ks[5], (B, 1, H), jnp.float32)
    # Stands in for the per-step torch.randn(h.shape)*0.01 draws (time-major,
    # first-update noise in [:, :H], second-update noise in [:, H:]).
    noise = 0.01 * jax.random.normal(ks[6], (S * B, 2 * H), jnp.float32)

    out, hidden = rate_rnn_forward(x, h0, noise, params, tau, dt)
    jax.block_until_ready((out, hidden))

    out_exp, hid_exp = reference(x, h0, noise, params, tau, dt)

    assert out.shape == (B, S, O) and hidden.shape == (B, S, H)
    assert np.allclose(np.asarray(hidden), np.asarray(hid_exp),
                       atol=1e-4, rtol=1e-4)
    assert np.allclose(np.asarray(out), np.asarray(out_exp),
                       atol=1e-4, rtol=1e-3)
    assert np.allclose(np.asarray(out).sum(axis=2), 1.0, atol=1e-5)

    print("KERNEL_OK")
</pallas_src>

<mosaic_0001>
module attributes {stable_mosaic.version = 11 : i64} {
  func.func @rate_rnn_kernel(%arg0: memref<16x16xf32, #tpu.memory_space<vmem>>, %arg1: memref<2x32xf32, #tpu.memory_space<vmem>>, %arg2: memref<16x64xf32, #tpu.memory_space<vmem>>, %arg3: memref<48x32xf32, #tpu.memory_space<vmem>>, %arg4: memref<33x8xf32, #tpu.memory_space<vmem>>, %arg5: memref<16x8xf32, #tpu.memory_space<vmem>>, %arg6: memref<16x32xf32, #tpu.memory_space<vmem>>) attributes {dimension_semantics = [], scalar_prefetch = 0 : i64, scratch_operands = 0 : i64, tpu.core_type = #tpu.core_type<tc>} {
    %c0 = arith.constant 0 : index
    %c0_0 = arith.constant 0 : index
    %0 = vector.load %arg3[%c0, %c0_0] : memref<48x32xf32, #tpu.memory_space<vmem>>, vector<48x32xf32>
    %1 = vector.extract_strided_slice %0 {offsets = [0, 0], sizes = [16, 32], strides = [1, 1]} : vector<48x32xf32> to vector<16x32xf32>
    %cst = arith.constant 1.000000e-01 : f32
    %2 = vector.broadcast %cst : f32 to vector<16x32xf32>
    %3 = arith.mulf %2, %1 : vector<16x32xf32>
    %4 = vector.extract_strided_slice %0 {offsets = [16, 0], sizes = [32, 32], strides = [1, 1]} : vector<48x32xf32> to vector<32x32xf32>
    %cst_1 = arith.constant 1.000000e-01 : f32
    %5 = vector.broadcast %cst_1 : f32 to vector<32x32xf32>
    %6 = arith.mulf %5, %4 : vector<32x32xf32>
    %c0_2 = arith.constant 0 : index
    %c0_3 = arith.constant 0 : index
    %7 = vector.load %arg4[%c0_2, %c0_3] : memref<33x8xf32, #tpu.memory_space<vmem>>, vector<33x8xf32>
    %8 = vector.extract_strided_slice %7 {offsets = [0, 0], sizes = [32, 8], strides = [1, 1]} : vector<33x8xf32> to vector<32x8xf32>
    %9 = vector.extract_strided_slice %7 {offsets = [32, 0], sizes = [1, 8], strides = [1, 1]} : vector<33x8xf32> to vector<1x8xf32>
    %c0_4 = arith.constant 0 : index
    %c0_5 = arith.constant 0 : index
    %10 = vector.load %arg2[%c0_4, %c0_5] : memref<16x64xf32, #tpu.memory_space<vmem>>, vector<16x64xf32>
    %11 = vector.extract_strided_slice %10 {offsets = [0, 0], sizes = [16, 32], strides = [1, 1]} : vector<16x64xf32> to vector<16x32xf32>
    %12 = vector.extract_strided_slice %10 {offsets = [0, 32], sizes = [16, 32], strides = [1, 1]} : vector<16x64xf32> to vector<16x32xf32>
    %c0_6 = arith.constant 0 : index
    %c0_7 = arith.constant 0 : index
    %13 = vector.load %arg0[%c0_6, %c0_7] : memref<16x16xf32, #tpu.memory_space<vmem>>, vector<16x16xf32>
    %cst_8 = arith.constant dense<0.000000e+00> : vector<16x32xf32>
    %14 = tpu.matmul %13, %3, %cst_8 {dimension_numbers = #tpu.dot_dimension_numbers<[1], [0], [0], [1], [0, 0, 1, 1], [], []>} : vector<16x16xf32>, vector<16x32xf32>, vector<16x32xf32> -> vector<16x32xf32>
    %c0_9 = arith.constant 0 : index
    %c0_10 = arith.constant 0 : index
    %15 = vector.load %arg1[%c0_9, %c0_10] : memref<2x32xf32, #tpu.memory_space<vmem>>, vector<2x32xf32>
    %cst_11 = arith.constant 5.000000e-01 : f32
    %16 = vector.broadcast %cst_11 : f32 to vector<2x32xf32>
    %17 = arith.mulf %16, %15 : vector<2x32xf32>
    %18 = math.tanh %17 : vector<2x32xf32>
    %cst_12 = arith.constant 5.000000e-01 : f32
    %19 = vector.broadcast %cst_12 : f32 to vector<2x32xf32>
    %20 = arith.mulf %19, %18 : vector<2x32xf32>
    %cst_13 = arith.constant 5.000000e-01 : f32
    %21 = vector.broadcast %cst_13 : f32 to vector<2x32xf32>
    %22 = arith.addf %20, %21 : vector<2x32xf32>
    %cst_14 = arith.constant dense<0.000000e+00> : vector<2x32xf32>
    %23 = tpu.matmul %22, %6, %cst_14 {dimension_numbers = #tpu.dot_dimension_numbers<[1], [0], [0], [1], [0, 0, 1, 1], [], []>} : vector<2x32xf32>, vector<32x32xf32>, vector<2x32xf32> -> vector<2x32xf32>
    %cst_15 = arith.constant 0.899999976 : f32
    %24 = vector.broadcast %cst_15 : f32 to vector<2x32xf32>
    %25 = arith.mulf %24, %15 : vector<2x32xf32>
    %26 = vector.extract_strided_slice %14 {offsets = [0, 0], sizes = [2, 32], strides = [1, 1]} : vector<16x32xf32> to vector<2x32xf32>
    %27 = arith.addf %23, %26 : vector<2x32xf32>
    %28 = arith.addf %25, %27 : vector<2x32xf32>
    %29 = vector.extract_strided_slice %11 {offsets = [0, 0], sizes = [2, 32], strides = [1, 1]} : vector<16x32xf32> to vector<2x32xf32>
    %30 = arith.addf %28, %29 : vector<2x32xf32>
    %cst_16 = arith.constant 5.000000e-01 : f32
    %31 = vector.broadcast %cst_16 : f32 to vector<2x32xf32>
    %32 = arith.mulf %31, %30 : vector<2x32xf32>
    %33 = math.tanh %32 : vector<2x32xf32>
    %cst_17 = arith.constant 5.000000e-01 : f32
    %34 = vector.broadcast %cst_17 : f32 to vector<2x32xf32>
    %35 = arith.mulf %34, %33 : vector<2x32xf32>
    %cst_18 = arith.constant 5.000000e-01 : f32
    %36 = vector.broadcast %cst_18 : f32 to vector<2x32xf32>
    %37 = arith.addf %35, %36 : vector<2x32xf32>
    %cst_19 = arith.constant dense<0.000000e+00> : vector<2x32xf32>
    %38 = tpu.matmul %37, %6, %cst_19 {dimension_numbers = #tpu.dot_dimension_numbers<[1], [0], [0], [1], [0, 0, 1, 1], [], []>} : vector<2x32xf32>, vector<32x32xf32>, vector<2x32xf32> -> vector<2x32xf32>
    %cst_20 = arith.constant 0.899999976 : f32
    %39 = vector.broadcast %cst_20 : f32 to vector<2x32xf32>
    %40 = arith.mulf %39, %30 : vector<2x32xf32>
    %41 = arith.addf %40, %38 : vector<2x32xf32>
    %42 = vector.extract_strided_slice %12 {offsets = [0, 0], sizes = [2, 32], strides = [1, 1]} : vector<16x32xf32> to vector<2x32xf32>
    %43 = arith.addf %41, %42 : vector<2x32xf32>
    %cst_21 = arith.constant 5.000000e-01 : f32
    %44 = vector.broadcast %cst_21 : f32 to vector<2x32xf32>
    %45 = arith.mulf %44, %43 : vector<2x32xf32>
    %46 = math.tanh %45 : vector<2x32xf32>
    %cst_22 = arith.constant 5.000000e-01 : f32
    %47 = vector.broadcast %cst_22 : f32 to vector<2x32xf32>
    %48 = arith.mulf %47, %46 : vector<2x32xf32>
    %cst_23 = arith.constant 5.000000e-01 : f32
    %49 = vector.broadcast %cst_23 : f32 to vector<2x32xf32>
    %50 = arith.addf %48, %49 : vector<2x32xf32>
    %cst_24 = arith.constant dense<0.000000e+00> : vector<2x8xf32>
    %51 = tpu.matmul %50, %8, %cst_24 {dimension_numbers = #tpu.dot_dimension_numbers<[1], [0], [0], [1], [0, 0, 1, 1], [], []>} : vector<2x32xf32>, vector<32x8xf32>, vector<2x8xf32> -> vector<2x8xf32>
    %52 = vector.broadcast %9 : vector<1x8xf32> to vector<2x8xf32>
    %53 = arith.addf %51, %52 : vector<2x8xf32>
    %cst_25 = arith.constant 0.899999976 : f32
    %54 = vector.broadcast %cst_25 : f32 to vector<2x32xf32>
    %55 = arith.mulf %54, %30 : vector<2x32xf32>
    %56 = vector.extract_strided_slice %14 {offsets = [2, 0], sizes = [2, 32], strides = [1, 1]} : vector<16x32xf32> to vector<2x32xf32>
    %57 = arith.addf %38, %56 : vector<2x32xf32>
    %58 = arith.addf %55, %57 : vector<2x32xf32>
    %59 = vector.extract_strided_slice %11 {offsets = [2, 0], sizes = [2, 32], strides = [1, 1]} : vector<16x32xf32> to vector<2x32xf32>
    %60 = arith.addf %58, %59 : vector<2x32xf32>
    %cst_26 = arith.constant 5.000000e-01 : f32
    %61 = vector.broadcast %cst_26 : f32 to vector<2x32xf32>
    %62 = arith.mulf %61, %60 : vector<2x32xf32>
    %63 = math.tanh %62 : vector<2x32xf32>
    %cst_27 = arith.constant 5.000000e-01 : f32
    %64 = vector.broadcast %cst_27 : f32 to vector<2x32xf32>
    %65 = arith.mulf %64, %63 : vector<2x32xf32>
    %cst_28 = arith.constant 5.000000e-01 : f32
    %66 = vector.broadcast %cst_28 : f32 to vector<2x32xf32>
    %67 = arith.addf %65, %66 : vector<2x32xf32>
    %cst_29 = arith.constant dense<0.000000e+00> : vector<2x32xf32>
    %68 = tpu.matmul %67, %6, %cst_29 {dimension_numbers = #tpu.dot_dimension_numbers<[1], [0], [0], [1], [0, 0, 1, 1], [], []>} : vector<2x32xf32>, vector<32x32xf32>, vector<2x32xf32> -> vector<2x32xf32>
    %cst_30 = arith.constant 0.899999976 : f32
    %69 = vector.broadcast %cst_30 : f32 to vector<2x32xf32>
    %70 = arith.mulf %69, %60 : vector<2x32xf32>
    %71 = arith.addf %70, %68 : vector<2x32xf32>
    %72 = vector.extract_strided_slice %12 {offsets = [2, 0], sizes = [2, 32], strides = [1, 1]} : vector<16x32xf32> to vector<2x32xf32>
    %73 = arith.addf %71, %72 : vector<2x32xf32>
    %cst_31 = arith.constant 5.000000e-01 : f32
    %74 = vector.broadcast %cst_31 : f32 to vector<2x32xf32>
    %75 = arith.mulf %74, %73 : vector<2x32xf32>
    %76 = math.tanh %75 : vector<2x32xf32>
    %cst_32 = arith.constant 5.000000e-01 : f32
    %77 = vector.broadcast %cst_32 : f32 to vector<2x32xf32>
    %78 = arith.mulf %77, %76 : vector<2x32xf32>
    %cst_33 = arith.constant 5.000000e-01 : f32
    %79 = vector.broadcast %cst_33 : f32 to vector<2x32xf32>
    %80 = arith.addf %78, %79 : vector<2x32xf32>
    %cst_34 = arith.constant dense<0.000000e+00> : vector<2x8xf32>
    %81 = tpu.matmul %80, %8, %cst_34 {dimension_numbers = #tpu.dot_dimension_numbers<[1], [0], [0], [1], [0, 0, 1, 1], [], []>} : vector<2x32xf32>, vector<32x8xf32>, vector<2x8xf32> -> vector<2x8xf32>
    %82 = vector.broadcast %9 : vector<1x8xf32> to vector<2x8xf32>
    %83 = arith.addf %81, %82 : vector<2x8xf32>
    %cst_35 = arith.constant 0.899999976 : f32
    %84 = vector.broadcast %cst_35 : f32 to vector<2x32xf32>
    %85 = arith.mulf %84, %60 : vector<2x32xf32>
    %86 = vector.extract_strided_slice %14 {offsets = [4, 0], sizes = [2, 32], strides = [1, 1]} : vector<16x32xf32> to vector<2x32xf32>
    %87 = arith.addf %68, %86 : vector<2x32xf32>
    %88 = arith.addf %85, %87 : vector<2x32xf32>
    %89 = vector.extract_strided_slice %11 {offsets = [4, 0], sizes = [2, 32], strides = [1, 1]} : vector<16x32xf32> to vector<2x32xf32>
    %90 = arith.addf %88, %89 : vector<2x32xf32>
    %cst_36 = arith.constant 5.000000e-01 : f32
    %91 = vector.broadcast %cst_36 : f32 to vector<2x32xf32>
    %92 = arith.mulf %91, %90 : vector<2x32xf32>
    %93 = math.tanh %92 : vector<2x32xf32>
    %cst_37 = arith.constant 5.000000e-01 : f32
    %94 = vector.broadcast %cst_37 : f32 to vector<2x32xf32>
    %95 = arith.mulf %94, %93 : vector<2x32xf32>
    %cst_38 = arith.constant 5.000000e-01 : f32
    %96 = vector.broadcast %cst_38 : f32 to vector<2x32xf32>
    %97 = arith.addf %95, %96 : vector<2x32xf32>
    %cst_39 = arith.constant dense<0.000000e+00> : vector<2x32xf32>
    %98 = tpu.matmul %97, %6, %cst_39 {dimension_numbers = #tpu.dot_dimension_numbers<[1], [0], [0], [1], [0, 0, 1, 1], [], []>} : vector<2x32xf32>, vector<32x32xf32>, vector<2x32xf32> -> vector<2x32xf32>
    %cst_40 = arith.constant 0.899999976 : f32
    %99 = vector.broadcast %cst_40 : f32 to vector<2x32xf32>
    %100 = arith.mulf %99, %90 : vector<2x32xf32>
    %101 = arith.addf %100, %98 : vector<2x32xf32>
    %102 = vector.extract_strided_slice %12 {offsets = [4, 0], sizes = [2, 32], strides = [1, 1]} : vector<16x32xf32> to vector<2x32xf32>
    %103 = arith.addf %101, %102 : vector<2x32xf32>
    %cst_41 = arith.constant 5.000000e-01 : f32
    %104 = vector.broadcast %cst_41 : f32 to vector<2x32xf32>
    %105 = arith.mulf %104, %103 : vector<2x32xf32>
    %106 = math.tanh %105 : vector<2x32xf32>
    %cst_42 = arith.constant 5.000000e-01 : f32
    %107 = vector.broadcast %cst_42 : f32 to vector<2x32xf32>
    %108 = arith.mulf %107, %106 : vector<2x32xf32>
    %cst_43 = arith.constant 5.000000e-01 : f32
    %109 = vector.broadcast %cst_43 : f32 to vector<2x32xf32>
    %110 = arith.addf %108, %109 : vector<2x32xf32>
    %cst_44 = arith.constant dense<0.000000e+00> : vector<2x8xf32>
    %111 = tpu.matmul %110, %8, %cst_44 {dimension_numbers = #tpu.dot_dimension_numbers<[1], [0], [0], [1], [0, 0, 1, 1], [], []>} : vector<2x32xf32>, vector<32x8xf32>, vector<2x8xf32> -> vector<2x8xf32>
    %112 = vector.broadcast %9 : vector<1x8xf32> to vector<2x8xf32>
    %113 = arith.addf %111, %112 : vector<2x8xf32>
    %cst_45 = arith.constant 0.899999976 : f32
    %114 = vector.broadcast %cst_45 : f32 to vector<2x32xf32>
    %115 = arith.mulf %114, %90 : vector<2x32xf32>
    %116 = vector.extract_strided_slice %14 {offsets = [6, 0], sizes = [2, 32], strides = [1, 1]} : vector<16x32xf32> to vector<2x32xf32>
    %117 = arith.addf %98, %116 : vector<2x32xf32>
    %118 = arith.addf %115, %117 : vector<2x32xf32>
    %119 = vector.extract_strided_slice %11 {offsets = [6, 0], sizes = [2, 32], strides = [1, 1]} : vector<16x32xf32> to vector<2x32xf32>
    %120 = arith.addf %118, %119 : vector<2x32xf32>
    %cst_46 = arith.constant 5.000000e-01 : f32
    %121 = vector.broadcast %cst_46 : f32 to vector<2x32xf32>
    %122 = arith.mulf %121, %120 : vector<2x32xf32>
    %123 = math.tanh %122 : vector<2x32xf32>
    %cst_47 = arith.constant 5.000000e-01 : f32
    %124 = vector.broadcast %cst_47 : f32 to vector<2x32xf32>
    %125 = arith.mulf %124, %123 : vector<2x32xf32>
    %cst_48 = arith.constant 5.000000e-01 : f32
    %126 = vector.broadcast %cst_48 : f32 to vector<2x32xf32>
    %127 = arith.addf %125, %126 : vector<2x32xf32>
    %cst_49 = arith.constant dense<0.000000e+00> : vector<2x32xf32>
    %128 = tpu.matmul %127, %6, %cst_49 {dimension_numbers = #tpu.dot_dimension_numbers<[1], [0], [0], [1], [0, 0, 1, 1], [], []>} : vector<2x32xf32>, vector<32x32xf32>, vector<2x32xf32> -> vector<2x32xf32>
    %cst_50 = arith.constant 0.899999976 : f32
    %129 = vector.broadcast %cst_50 : f32 to vector<2x32xf32>
    %130 = arith.mulf %129, %120 : vector<2x32xf32>
    %131 = arith.addf %130, %128 : vector<2x32xf32>
    %132 = vector.extract_strided_slice %12 {offsets = [6, 0], sizes = [2, 32], strides = [1, 1]} : vector<16x32xf32> to vector<2x32xf32>
    %133 = arith.addf %131, %132 : vector<2x32xf32>
    %cst_51 = arith.constant 5.000000e-01 : f32
    %134 = vector.broadcast %cst_51 : f32 to vector<2x32xf32>
    %135 = arith.mulf %134, %133 : vector<2x32xf32>
    %136 = math.tanh %135 : vector<2x32xf32>
    %cst_52 = arith.constant 5.000000e-01 : f32
    %137 = vector.broadcast %cst_52 : f32 to vector<2x32xf32>
    %138 = arith.mulf %137, %136 : vector<2x32xf32>
    %cst_53 = arith.constant 5.000000e-01 : f32
    %139 = vector.broadcast %cst_53 : f32 to vector<2x32xf32>
    %140 = arith.addf %138, %139 : vector<2x32xf32>
    %cst_54 = arith.constant dense<0.000000e+00> : vector<2x8xf32>
    %141 = tpu.matmul %140, %8, %cst_54 {dimension_numbers = #tpu.dot_dimension_numbers<[1], [0], [0], [1], [0, 0, 1, 1], [], []>} : vector<2x32xf32>, vector<32x8xf32>, vector<2x8xf32> -> vector<2x8xf32>
    %142 = vector.broadcast %9 : vector<1x8xf32> to vector<2x8xf32>
    %143 = arith.addf %141, %142 : vector<2x8xf32>
    %cst_55 = arith.constant 0.899999976 : f32
    %144 = vector.broadcast %cst_55 : f32 to vector<2x32xf32>
    %145 = arith.mulf %144, %120 : vector<2x32xf32>
    %146 = vector.extract_strided_slice %14 {offsets = [8, 0], sizes = [2, 32], strides = [1, 1]} : vector<16x32xf32> to vector<2x32xf32>
    %147 = arith.addf %128, %146 : vector<2x32xf32>
    %148 = arith.addf %145, %147 : vector<2x32xf32>
    %149 = vector.extract_strided_slice %11 {offsets = [8, 0], sizes = [2, 32], strides = [1, 1]} : vector<16x32xf32> to vector<2x32xf32>
    %150 = arith.addf %148, %149 : vector<2x32xf32>
    %cst_56 = arith.constant 5.000000e-01 : f32
    %151 = vector.broadcast %cst_56 : f32 to vector<2x32xf32>
    %152 = arith.mulf %151, %150 : vector<2x32xf32>
    %153 = math.tanh %152 : vector<2x32xf32>
    %cst_57 = arith.constant 5.000000e-01 : f32
    %154 = vector.broadcast %cst_57 : f32 to vector<2x32xf32>
    %155 = arith.mulf %154, %153 : vector<2x32xf32>
    %cst_58 = arith.constant 5.000000e-01 : f32
    %156 = vector.broadcast %cst_58 : f32 to vector<2x32xf32>
    %157 = arith.addf %155, %156 : vector<2x32xf32>
    %cst_59 = arith.constant dense<0.000000e+00> : vector<2x32xf32>
    %158 = tpu.matmul %157, %6, %cst_59 {dimension_numbers = #tpu.dot_dimension_numbers<[1], [0], [0], [1], [0, 0, 1, 1], [], []>} : vector<2x32xf32>, vector<32x32xf32>, vector<2x32xf32> -> vector<2x32xf32>
    %cst_60 = arith.constant 0.899999976 : f32
    %159 = vector.broadcast %cst_60 : f32 to vector<2x32xf32>
    %160 = arith.mulf %159, %150 : vector<2x32xf32>
    %161 = arith.addf %160, %158 : vector<2x32xf32>
    %162 = vector.extract_strided_slice %12 {offsets = [8, 0], sizes = [2, 32], strides = [1, 1]} : vector<16x32xf32> to vector<2x32xf32>
    %163 = arith.addf %161, %162 : vector<2x32xf32>
    %cst_61 = arith.constant 5.000000e-01 : f32
    %164 = vector.broadcast %cst_61 : f32 to vector<2x32xf32>
    %165 = arith.mulf %164, %163 : vector<2x32xf32>
    %166 = math.tanh %165 : vector<2x32xf32>
    %cst_62 = arith.constant 5.000000e-01 : f32
    %167 = vector.broadcast %cst_62 : f32 to vector<2x32xf32>
    %168 = arith.mulf %167, %166 : vector<2x32xf32>
    %cst_63 = arith.constant 5.000000e-01 : f32
    %169 = vector.broadcast %cst_63 : f32 to vector<2x32xf32>
    %170 = arith.addf %168, %169 : vector<2x32xf32>
    %cst_64 = arith.constant dense<0.000000e+00> : vector<2x8xf32>
    %171 = tpu.matmul %170, %8, %cst_64 {dimension_numbers = #tpu.dot_dimension_numbers<[1], [0], [0], [1], [0, 0, 1, 1], [], []>} : vector<2x32xf32>, vector<32x8xf32>, vector<2x8xf32> -> vector<2x8xf32>
    %172 = vector.broadcast %9 : vector<1x8xf32> to vector<2x8xf32>
    %173 = arith.addf %171, %172 : vector<2x8xf32>
    %cst_65 = arith.constant 0.899999976 : f32
    %174 = vector.broadcast %cst_65 : f32 to vector<2x32xf32>
    %175 = arith.mulf %174, %150 : vector<2x32xf32>
    %176 = vector.extract_strided_slice %14 {offsets = [10, 0], sizes = [2, 32], strides = [1, 1]} : vector<16x32xf32> to vector<2x32xf32>
    %177 = arith.addf %158, %176 : vector<2x32xf32>
    %178 = arith.addf %175, %177 : vector<2x32xf32>
    %179 = vector.extract_strided_slice %11 {offsets = [10, 0], sizes = [2, 32], strides = [1, 1]} : vector<16x32xf32> to vector<2x32xf32>
    %180 = arith.addf %178, %179 : vector<2x32xf32>
    %cst_66 = arith.constant 5.000000e-01 : f32
    %181 = vector.broadcast %cst_66 : f32 to vector<2x32xf32>
    %182 = arith.mulf %181, %180 : vector<2x32xf32>
    %183 = math.tanh %182 : vector<2x32xf32>
    %cst_67 = arith.constant 5.000000e-01 : f32
    %184 = vector.broadcast %cst_67 : f32 to vector<2x32xf32>
    %185 = arith.mulf %184, %183 : vector<2x32xf32>
    %cst_68 = arith.constant 5.000000e-01 : f32
    %186 = vector.broadcast %cst_68 : f32 to vector<2x32xf32>
    %187 = arith.addf %185, %186 : vector<2x32xf32>
    %cst_69 = arith.constant dense<0.000000e+00> : vector<2x32xf32>
    %188 = tpu.matmul %187, %6, %cst_69 {dimension_numbers = #tpu.dot_dimension_numbers<[1], [0], [0], [1], [0, 0, 1, 1], [], []>} : vector<2x32xf32>, vector<32x32xf32>, vector<2x32xf32> -> vector<2x32xf32>
    %cst_70 = arith.constant 0.899999976 : f32
    %189 = vector.broadcast %cst_70 : f32 to vector<2x32xf32>
    %190 = arith.mulf %189, %180 : vector<2x32xf32>
    %191 = arith.addf %190, %188 : vector<2x32xf32>
    %192 = vector.extract_strided_slice %12 {offsets = [10, 0], sizes = [2, 32], strides = [1, 1]} : vector<16x32xf32> to vector<2x32xf32>
    %193 = arith.addf %191, %192 : vector<2x32xf32>
    %cst_71 = arith.constant 5.000000e-01 : f32
    %194 = vector.broadcast %cst_71 : f32 to vector<2x32xf32>
    %195 = arith.mulf %194, %193 : vector<2x32xf32>
    %196 = math.tanh %195 : vector<2x32xf32>
    %cst_72 = arith.constant 5.000000e-01 : f32
    %197 = vector.broadcast %cst_72 : f32 to vector<2x32xf32>
    %198 = arith.mulf %197, %196 : vector<2x32xf32>
    %cst_73 = arith.constant 5.000000e-01 : f32
    %199 = vector.broadcast %cst_73 : f32 to vector<2x32xf32>
    %200 = arith.addf %198, %199 : vector<2x32xf32>
    %cst_74 = arith.constant dense<0.000000e+00> : vector<2x8xf32>
    %201 = tpu.matmul %200, %8, %cst_74 {dimension_numbers = #tpu.dot_dimension_numbers<[1], [0], [0], [1], [0, 0, 1, 1], [], []>} : vector<2x32xf32>, vector<32x8xf32>, vector<2x8xf32> -> vector<2x8xf32>
    %202 = vector.broadcast %9 : vector<1x8xf32> to vector<2x8xf32>
    %203 = arith.addf %201, %202 : vector<2x8xf32>
    %cst_75 = arith.constant 0.899999976 : f32
    %204 = vector.broadcast %cst_75 : f32 to vector<2x32xf32>
    %205 = arith.mulf %204, %180 : vector<2x32xf32>
    %206 = vector.extract_strided_slice %14 {offsets = [12, 0], sizes = [2, 32], strides = [1, 1]} : vector<16x32xf32> to vector<2x32xf32>
    %207 = arith.addf %188, %206 : vector<2x32xf32>
    %208 = arith.addf %205, %207 : vector<2x32xf32>
    %209 = vector.extract_strided_slice %11 {offsets = [12, 0], sizes = [2, 32], strides = [1, 1]} : vector<16x32xf32> to vector<2x32xf32>
    %210 = arith.addf %208, %209 : vector<2x32xf32>
    %cst_76 = arith.constant 5.000000e-01 : f32
    %211 = vector.broadcast %cst_76 : f32 to vector<2x32xf32>
    %212 = arith.mulf %211, %210 : vector<2x32xf32>
    %213 = math.tanh %212 : vector<2x32xf32>
    %cst_77 = arith.constant 5.000000e-01 : f32
    %214 = vector.broadcast %cst_77 : f32 to vector<2x32xf32>
    %215 = arith.mulf %214, %213 : vector<2x32xf32>
    %cst_78 = arith.constant 5.000000e-01 : f32
    %216 = vector.broadcast %cst_78 : f32 to vector<2x32xf32>
    %217 = arith.addf %215, %216 : vector<2x32xf32>
    %cst_79 = arith.constant dense<0.000000e+00> : vector<2x32xf32>
    %218 = tpu.matmul %217, %6, %cst_79 {dimension_numbers = #tpu.dot_dimension_numbers<[1], [0], [0], [1], [0, 0, 1, 1], [], []>} : vector<2x32xf32>, vector<32x32xf32>, vector<2x32xf32> -> vector<2x32xf32>
    %cst_80 = arith.constant 0.899999976 : f32
    %219 = vector.broadcast %cst_80 : f32 to vector<2x32xf32>
    %220 = arith.mulf %219, %210 : vector<2x32xf32>
    %221 = arith.addf %220, %218 : vector<2x32xf32>
    %222 = vector.extract_strided_slice %12 {offsets = [12, 0], sizes = [2, 32], strides = [1, 1]} : vector<16x32xf32> to vector<2x32xf32>
    %223 = arith.addf %221, %222 : vector<2x32xf32>
    %cst_81 = arith.constant 5.000000e-01 : f32
    %224 = vector.broadcast %cst_81 : f32 to vector<2x32xf32>
    %225 = arith.mulf %224, %223 : vector<2x32xf32>
    %226 = math.tanh %225 : vector<2x32xf32>
    %cst_82 = arith.constant 5.000000e-01 : f32
    %227 = vector.broadcast %cst_82 : f32 to vector<2x32xf32>
    %228 = arith.mulf %227, %226 : vector<2x32xf32>
    %cst_83 = arith.constant 5.000000e-01 : f32
    %229 = vector.broadcast %cst_83 : f32 to vector<2x32xf32>
    %230 = arith.addf %228, %229 : vector<2x32xf32>
    %cst_84 = arith.constant dense<0.000000e+00> : vector<2x8xf32>
    %231 = tpu.matmul %230, %8, %cst_84 {dimension_numbers = #tpu.dot_dimension_numbers<[1], [0], [0], [1], [0, 0, 1, 1], [], []>} : vector<2x32xf32>, vector<32x8xf32>, vector<2x8xf32> -> vector<2x8xf32>
    %232 = vector.broadcast %9 : vector<1x8xf32> to vector<2x8xf32>
    %233 = arith.addf %231, %232 : vector<2x8xf32>
    %cst_85 = arith.constant 0.899999976 : f32
    %234 = vector.broadcast %cst_85 : f32 to vector<2x32xf32>
    %235 = arith.mulf %234, %210 : vector<2x32xf32>
    %236 = vector.extract_strided_slice %14 {offsets = [14, 0], sizes = [2, 32], strides = [1, 1]} : vector<16x32xf32> to vector<2x32xf32>
    %237 = arith.addf %218, %236 : vector<2x32xf32>
    %238 = arith.addf %235, %237 : vector<2x32xf32>
    %239 = vector.extract_strided_slice %11 {offsets = [14, 0], sizes = [2, 32], strides = [1, 1]} : vector<16x32xf32> to vector<2x32xf32>
    %240 = arith.addf %238, %239 : vector<2x32xf32>
    %cst_86 = arith.constant 5.000000e-01 : f32
    %241 = vector.broadcast %cst_86 : f32 to vector<2x32xf32>
    %242 = arith.mulf %241, %240 : vector<2x32xf32>
    %243 = math.tanh %242 : vector<2x32xf32>
    %cst_87 = arith.constant 5.000000e-01 : f32
    %244 = vector.broadcast %cst_87 : f32 to vector<2x32xf32>
    %245 = arith.mulf %244, %243 : vector<2x32xf32>
    %cst_88 = arith.constant 5.000000e-01 : f32
    %246 = vector.broadcast %cst_88 : f32 to vector<2x32xf32>
    %247 = arith.addf %245, %246 : vector<2x32xf32>
    %cst_89 = arith.constant dense<0.000000e+00> : vector<2x32xf32>
    %248 = tpu.matmul %247, %6, %cst_89 {dimension_numbers = #tpu.dot_dimension_numbers<[1], [0], [0], [1], [0, 0, 1, 1], [], []>} : vector<2x32xf32>, vector<32x32xf32>, vector<2x32xf32> -> vector<2x32xf32>
    %cst_90 = arith.constant 0.899999976 : f32
    %249 = vector.broadcast %cst_90 : f32 to vector<2x32xf32>
    %250 = arith.mulf %249, %240 : vector<2x32xf32>
    %251 = arith.addf %250, %248 : vector<2x32xf32>
    %252 = vector.extract_strided_slice %12 {offsets = [14, 0], sizes = [2, 32], strides = [1, 1]} : vector<16x32xf32> to vector<2x32xf32>
    %253 = arith.addf %251, %252 : vector<2x32xf32>
    %cst_91 = arith.constant 5.000000e-01 : f32
    %254 = vector.broadcast %cst_91 : f32 to vector<2x32xf32>
    %255 = arith.mulf %254, %253 : vector<2x32xf32>
    %256 = math.tanh %255 : vector<2x32xf32>
    %cst_92 = arith.constant 5.000000e-01 : f32
    %257 = vector.broadcast %cst_92 : f32 to vector<2x32xf32>
    %258 = arith.mulf %257, %256 : vector<2x32xf32>
    %cst_93 = arith.constant 5.000000e-01 : f32
    %259 = vector.broadcast %cst_93 : f32 to vector<2x32xf32>
    %260 = arith.addf %258, %259 : vector<2x32xf32>
    %cst_94 = arith.constant dense<0.000000e+00> : vector<2x8xf32>
    %261 = tpu.matmul %260, %8, %cst_94 {dimension_numbers = #tpu.dot_dimension_numbers<[1], [0], [0], [1], [0, 0, 1, 1], [], []>} : vector<2x32xf32>, vector<32x8xf32>, vector<2x8xf32> -> vector<2x8xf32>
    %262 = vector.broadcast %9 : vector<1x8xf32> to vector<2x8xf32>
    %263 = arith.addf %261, %262 : vector<2x8xf32>
    %264 = tpu.concatenate %43, %73, %103, %133, %163, %193, %223, %253 in 0 : vector<2x32xf32>, vector<2x32xf32>, vector<2x32xf32>, vector<2x32xf32>, vector<2x32xf32>, vector<2x32xf32>, vector<2x32xf32>, vector<2x32xf32> -> vector<16x32xf32>
    %c0_95 = arith.constant 0 : index
    %c0_96 = arith.constant 0 : index
    %265 = vector.load %arg6[%c0_95, %c0_96] : memref<16x32xf32, #tpu.memory_space<vmem>>, vector<16x32xf32>
    tpu.vector_store %arg6[%c0_95, %c0_96], %264 {strides = array<i32>} : memref<16x32xf32, #tpu.memory_space<vmem>>, vector<16x32xf32>,
    %266 = tpu.concatenate %53, %83, %113, %143, %173, %203, %233, %263 in 0 : vector<2x8xf32>, vector<2x8xf32>, vector<2x8xf32>, vector<2x8xf32>, vector<2x8xf32>, vector<2x8xf32>, vector<2x8xf32>, vector<2x8xf32> -> vector<16x8xf32>
    %cst_97 = arith.constant dense<0xFF800000> : vector<16xf32>
    %267 = vector.multi_reduction <maximumf>, %266, %cst_97 [1] : vector<16x8xf32> to vector<16xf32>
    %268 = vector.shape_cast %267 : vector<16xf32> to vector<16x1xf32>
    %269 = vector.broadcast %268 : vector<16x1xf32> to vector<16x8xf32>
    %270 = arith.subf %266, %269 : vector<16x8xf32>
    %271 = math.exp %270 : vector<16x8xf32>
    %cst_98 = arith.constant dense<0.000000e+00> : vector<16xf32>
    %272 = vector.multi_reduction <add>, %271, %cst_98 [1] : vector<16x8xf32> to vector<16xf32>
    %273 = vector.shape_cast %272 : vector<16xf32> to vector<16x1xf32>
    %274 = vector.broadcast %273 : vector<16x1xf32> to vector<16x8xf32>
    %275 = arith.divf %271, %274 : vector<16x8xf32>
    %c0_99 = arith.constant 0 : index
    %c0_100 = arith.constant 0 : index
    %276 = vector.load %arg5[%c0_99, %c0_100] : memref<16x8xf32, #tpu.memory_space<vmem>>, vector<16x8xf32>
    tpu.vector_store %arg5[%c0_99, %c0_100], %275 {strides = array<i32>} : memref<16x8xf32, #tpu.memory_space<vmem>>, vector<16x8xf32>,
    return
  }
}

</mosaic_0001>

<bundles_post_ra>
// kernel: rate_rnn_forward.1
= control target key start
LH: loop header
LB: loop body
LE: loop exit
PB: predicated region body
PF: predicated region fallthrough
CT: control target
= control target key end

     0   :  { %v1974_v1 = vmov 0.0   ;;  %vm1975_vm0 = vmmov 0   ;;  %vm43_vm1 = vcmask 130048   ;;  %vm131_vm2 = vcmask 261120   ;;  %s2356_s3 = inlined_call_operand.vmem [shape: f32[48,32], index: 3, kind: input, shape index: {}]   ;;  %s2357_s0 = inlined_call_operand.vmem [shape: f32[16,16], index: 0, kind: input, shape index: {}]   ;;  %s2358_s1 = inlined_call_operand.vmem [shape: f32[2,32], index: 1, kind: input, shape index: {}]   ;;  %s2359_s2 = inlined_call_operand.vmem [shape: f32[16,64], index: 2, kind: input, shape index: {}]   ;;  %s2360_s4 = inlined_call_operand.vmem [shape: f32[33,8], index: 4, kind: input, shape index: {}]   ;;  %s2361_s6 = inlined_call_operand.vmem [shape: f32[16,32], index: 6, kind: output, shape index: {1}]   ;;  %s2362_s5 = inlined_call_operand.vmem [shape: f32[16,8], index: 5, kind: output, shape index: {0}]  }
   0x1   :  { %v23_v0 = vld [vmem:[%s2356_s3 + $0x8] sm:$0xff]  ;;  %1742 = vmatprep.subr.mxu1 %v1974_v1  ;;  %1750 = vmatprep.mubr.msk.f32.mxu1 %vm1975_vm0, %v1974_v1  ;;  %v25_v2 = vld [vmem:[%s2356_s3 + $0x18] sm:$0xff]  ;;  %v26_v3 = vld [vmem:[%s2356_s3 + $0x20] sm:$0xff]  ;;  %vm1558_vm3 = vcmask 1041408   ;;  %vm1560_vm4 = vcmask 1043456   ;;  %vm1562_vm5 = vcmask 1045504  }
   0x2   :  { %v27_v4 = vld [vmem:[%s2356_s3 + $0x28] sm:$0xff]  ;;  %v29_v5 = vmul.f32 0.1, %v23_v0  ;;  %v2027_v6 = vmul.f32 0.1, %v26_v3  ;;  %v24_v8 = vld [vmem:[%s2356_s3 + $0x10] sm:$0xff] }
   0x3   :  { %v2029_v7 = vmul.f32 0.1, %v27_v4  ;;  %v22_v9 = vld [vmem:[%s2356_s3] sm:$0xff]  ;;  %v2040_v11 = vmul.f32 0.1, %v25_v2  ;;  %v42_v14 = vld [vmem:[%s2357_s0 + $0x8] sm:$0xff] }
   0x4   :  { %1735 = vmatprep.subr.mxu0 %v29_v5  ;;  %v41_v10 = vld [vmem:[%s2357_s0] sm:$0xff]  ;;  %v28_v12 = vmul.f32 0.1, %v22_v9  ;;  %v2051_v16 = vmul.f32 0.1, %v24_v8  ;;  %s1976_s3 = smov 96  }
   0x5   :  { %1736 = vmatpush3.msra.mxu0 %v29_v5  ;;  %1743 = vmatpush3.msra.mxu1 %v2029_v7  ;;  %v125_v13 = vld [vmem:[%s2358_s1] sm:$0x3]  ;;  %v2103_v34 = vld [vmem:[%s2360_s4 + $0x18] sm:$0xff]  ;;  %v2110_v35 = vld [vmem:[%s2360_s4 + $0x10] sm:$0xff]  ;;  %vm1593_vm6 = vcmask 64512  }
   0x6   :  { %1744 = vmatprep.subr.mxu1 %v1974_v1  ;;  %1739 = vmatprep.mubr.msk.f32.mxu0 %vm43_vm1, %v41_v10  ;;  %v126_v15 = vmul.f32 0.5, %v125_v13  ;;  %v2077_v20 = vld [vmem:[%s2359_s2] sm:$0xff]  ;;  %v130_v22 = vmul.f32 0.9, %v125_v13  ;;  %v2117_v36 = vld [vmem:[%s2360_s4 + $0x8] sm:$0xff] }
   0x7   :  { %1737 = vmatprep.subr.mxu0 %v28_v12  ;;  %1745 = vmatpush3.msra.mxu1 %v2027_v6  ;;  %v377_v33 = vrot.slane %v2077_v20, 2  ;;  %v2124_v37 = vld [vmem:[%s2360_s4] sm:$0xff]  ;;  %v544_v56 = vrot.slane %v2077_v20, 4 }
   0x8   :  { %1738 = vmatpush3.msra.mxu0 %v28_v12  ;;  %1746 = vmatprep.subr.mxu1 %v1974_v1  ;;  %1932 = vtanh.f32 %v126_v15 }
   0x9   :  { %1740 = vmatmul.mubr.msk.f32.vlgmr.msra.gmra.mxu0 %vm43_vm1, %v42_v14  ;;  %1747 = vmatpush3.msra.mxu1 %v2040_v11 }
   0xa   :  { %1748 = vmatprep.subr.mxu1 %v1974_v1  ;;  %1753 = vmatprep.subr.mxu0 %v1974_v1 }
   0xb   :  { %1749 = vmatpush3.msra.mxu1 %v2051_v16  ;;  %1754 = vmatpush3.msra.mxu0 %v2029_v7 }
   0xc   :  { %1755 = vmatprep.subr.mxu0 %v1974_v1  ;;  %1761 = vmatprep.mubr.msk.f32.mxu0 %vm1975_vm0, %v1974_v1 }
   0xd   :  { %1756 = vmatpush3.msra.mxu0 %v2027_v6  ;;  %1764 = vmatprep.subr.mxu1 %v1974_v1 }
   0xe   :  { %1757 = vmatprep.subr.mxu0 %v1974_v1  ;;  %287 = vrot.lane.b32.xlu0 %v2077_v20, %s1976_s3 }
   0xf   :  { %1758 = vmatpush3.msra.mxu0 %v2040_v11  ;;  %626 = vrot.lane.b32.xlu1 %v544_v56, %s1976_s3 }
  0x10   :  { %1759 = vmatprep.subr.mxu0 %v1974_v1 }
  0x11   :  { %1760 = vmatpush3.msra.mxu0 %v2051_v16 }
  0x12   :  { %1775 = vmatprep.subr.mxu0 %v1974_v1  ;;  %459 = vrot.lane.b32.xlu0 %v377_v33, %s1976_s3 }
  0x15   :  { %v1933_v17 = vpop.eup %1932 }
  0x16   :  { %v128_v18 = vmul.f32 0.5, %v1933_v17 }
  0x18   :  { %v129_v19 = vadd.f32 0.5, %v128_v18  ;;  %v711_v18 = vrot.slane %v2077_v20, 6 }
  0x1a   :  { %1751 = vmatmul.mubr.msk.f32.vlgmr.msra.gmra.mxu1 %vm131_vm2, %v129_v19  ;;  %793 = vrot.lane.b32.xlu1 %v711_v18, %s1976_s3  ;;  %v2184_v19 = vld [vmem:[%s2360_s4 + $0x20] ss:$0 sm:$0xff] }
  0x1b   :  { %1772 = vmatprep.mubr.msk.f32.mxu1 %vm1975_vm0, %v1974_v1  ;;  %1765 = vmatpush3.msra.mxu1 %v2103_v34 }
  0x1c   :  { %1766 = vmatprep.subr.mxu1 %v1974_v1 }
  0x1d   :  { %1767 = vmatpush3.msra.mxu1 %v2110_v35 }
  0x1e   :  { %1768 = vmatprep.subr.mxu1 %v1974_v1 }
  0x1f   :  { %1769 = vmatpush3.msra.mxu1 %v2117_v36 }
  0x20   :  { %1770 = vmatprep.subr.mxu1 %v1974_v1 }
  0x21   :  { %1771 = vmatpush3.msra.mxu1 %v2124_v37 }
  0x22   :  { %1786 = vmatprep.subr.mxu1 %v1974_v1 }
  0x80   :  { %v288_v41 = vpop.permute.xlu0 %287 }
  0x84   :  { %v460_v60 = vpop.permute.xlu0 %459 }
  0xc9   :  { %v2081_v21 = vpop.f32.mrf.mxu0 }
  0xcb   :  { %v2083_v23 = vpop.f32.mrf.mxu0 }
  0xcc   :  { %v373_v39 = vrot.slane %v2083_v23, 2  ;;  %v540_v59 = vrot.slane %v2083_v23, 4 }
  0xda   :  { %v201_v24 = vpop.f32.mrf.mxu1 }
  0xdb   :  { %v202_v25 = vadd.f32 %v201_v24, %v2083_v23 }
  0xdc   :  { %v1752_v26 = vpop.f32.mrf.mxu1 }
  0xdd   :  { %v205_v27 = vadd.f32 %v202_v25, %v130_v22  ;;  %v707_v26 = vrot.slane %v2083_v23, 6 }
  0xdf   :  { %v206_v28 = vadd.f32 %v205_v27, %v2077_v20  ;;  %v627_v27 = vpop.permute.xlu1 %626 }
  0xe1   :  { %v207_v29 = vmul.f32 0.5, %v206_v28  ;;  %v284_v38 = vmul.f32 0.9, %v206_v28 }
  0xe3   :  { %1934 = vtanh.f32 %v207_v29 }
  0xf0   :  { %v1935_v30 = vpop.eup %1934 }
  0xf1   :  { %v209_v31 = vmul.f32 0.5, %v1935_v30 }
  0xf3   :  { %v210_v32 = vadd.f32 0.5, %v209_v31 }
  0xf5   :  { %1762 = vmatmul.mubr.msk.f32.vlgmr.msra.gmra.mxu0 %vm131_vm2, %v210_v32 }
  0xf6   :  { %1776 = vmatpush3.msra.mxu0 %v2029_v7  ;;  %1783 = vmatprep.mubr.msk.f32.mxu0 %vm1975_vm0, %v1974_v1 }
  0xf7   :  { %1777 = vmatprep.subr.mxu0 %v1974_v1 }
  0xf8   :  { %1778 = vmatpush3.msra.mxu0 %v2027_v6 }
  0xf9   :  { %1779 = vmatprep.subr.mxu0 %v1974_v1 }
  0xfa   :  { %1780 = vmatpush3.msra.mxu0 %v2040_v11 }
  0xfb   :  { %1781 = vmatprep.subr.mxu0 %v1974_v1 }
  0xfc   :  { %1782 = vmatpush3.msra.mxu0 %v2051_v16 }
  0xfd   :  { %1797 = vmatprep.subr.mxu0 %v1974_v1 }
 0x1b5   :  { %v280_v40 = vpop.f32.mrf.mxu0 }
 0x1b6   :  { %v285_v42 = vadd.f32 %v284_v38, %v280_v40  ;;  %v375_v43 = vadd.f32 %v373_v39, %v280_v40 }
 0x1b7   :  { %v1763_v44 = vpop.f32.mrf.mxu0 }
 0x1b8   :  { %v376_v45 = vadd.f32 %v375_v43, %v284_v38  ;;  %v2129_v46 = vadd.f32 %v288_v41, %v285_v42 }
 0x1ba   :  { %v379_v47 = vadd.f32 %v377_v33, %v376_v45  ;;  %v291_v48 = vmul.f32 0.5, %v2129_v46 }
 0x1bc   :  { %v380_v49 = vmul.f32 0.5, %v379_v47  ;;  %1936 = vtanh.f32 %v291_v48  ;;  %v457_v58 = vmul.f32 0.9, %v379_v47 }
 0x1be   :  { %1938 = vtanh.f32 %v380_v49 }
 0x1c9   :  { %v1937_v50 = vpop.eup %1936 }
 0x1ca   :  { %v293_v51 = vmul.f32 0.5, %v1937_v50 }
 0x1cb   :  { %v1939_v52 = vpop.eup %1938 }
 0x1cc   :  { %v382_v53 = vmul.f32 0.5, %v1939_v52  ;;  %v294_v54 = vadd.f32 0.5, %v293_v51 }
 0x1ce   :  { %1773 = vmatmul.mubr.msk.f32.vlgmr.msra.gmra.mxu1 %vm131_vm2, %v294_v54  ;;  %v383_v55 = vadd.f32 0.5, %v382_v53 }
 0x1cf   :  { %1787 = vmatpush3.msra.mxu1 %v2103_v34  ;;  %1794 = vmatprep.mubr.msk.f32.mxu1 %vm1975_vm0, %v1974_v1 }
 0x1d0   :  { %1784 = vmatmul.mubr.msk.f32.vlgmr.msra.gmra.mxu0 %vm131_vm2, %v383_v55  ;;  %1788 = vmatprep.subr.mxu1 %v1974_v1 }
 0x1d1   :  { %1789 = vmatpush3.msra.mxu1 %v2110_v35  ;;  %1798 = vmatpush3.msra.mxu0 %v2029_v7 }
 0x1d2   :  { %1790 = vmatprep.subr.mxu1 %v1974_v1  ;;  %1799 = vmatprep.subr.mxu0 %v1974_v1 }
 0x1d3   :  { %1791 = vmatpush3.msra.mxu1 %v2117_v36  ;;  %1800 = vmatpush3.msra.mxu0 %v2027_v6 }
 0x1d4   :  { %1792 = vmatprep.subr.mxu1 %v1974_v1  ;;  %1801 = vmatprep.subr.mxu0 %v1974_v1 }
 0x1d5   :  { %1793 = vmatpush3.msra.mxu1 %v2124_v37  ;;  %1802 = vmatpush3.msra.mxu0 %v2040_v11 }
 0x1d6   :  { %1803 = vmatprep.subr.mxu0 %v1974_v1  ;;  %1805 = vmatprep.mubr.msk.f32.mxu0 %vm1975_vm0, %v1974_v1 }
 0x1d7   :  { %1804 = vmatpush3.msra.mxu0 %v2051_v16  ;;  %1808 = vmatprep.subr.mxu1 %v1974_v1 }
 0x1d8   :  { %1819 = vmatprep.subr.mxu0 %v1974_v1 }
 0x28e   :  { %v368_v57 = vpop.f32.mrf.mxu1 }
 0x28f   :  { %v369_v30 = vadd.f32 %v2184_v19, %v368_v57 }
 0x290   :  { %v1774_v61 = vpop.f32.mrf.mxu1  ;;  %v453_v62 = vpop.f32.mrf.mxu0 }
 0x291   :  { %v458_v63 = vadd.f32 %v457_v58, %v453_v62  ;;  %v542_v0 = vadd.f32 %v540_v59, %v453_v62 }
 0x292   :  { %v1785_v2 = vpop.f32.mrf.mxu0 }
 0x293   :  { %v543_v3 = vadd.f32 %v542_v0, %v457_v58  ;;  %v462_v4 = vadd.f32 %v460_v60, %v458_v63  ;;  %v794_v58 = vpop.permute.xlu1 %793 }
 0x295   :  { %v546_v5 = vadd.f32 %v544_v56, %v543_v3  ;;  %v463_v8 = vmul.f32 0.5, %v462_v4  ;;  %v1541_v33 = vrot.slane %v462_v4, 6 }
 0x297   :  { %v547_v9 = vmul.f32 0.5, %v546_v5  ;;  %1940 = vtanh.f32 %v463_v8  ;;  %v624_v25 = vmul.f32 0.9, %v546_v5  ;;  %v1559_v23 = vsel %vm1558_vm3, %v2129_v46, %v1541_v33  ;;  %v2218_v46 = vld [vmem:[%s2359_s2 + $0x8] sm:$0xff] }
 0x298   :  { %957 = vrot.lane.b32.xlu0 %v2218_v46, %s1976_s3  ;;  %v1210_v54 = vrot.slane %v2218_v46, 4 }
 0x299   :  { %1942 = vtanh.f32 %v547_v9 }
 0x29c   :  { %1292 = vrot.lane.b32.xlu0 %v1210_v54, %s1976_s3 }
 0x2a4   :  { %v1941_v10 = vpop.eup %1940 }
 0x2a5   :  { %v465_v12 = vmul.f32 0.5, %v1941_v10 }
 0x2a6   :  { %v1943_v13 = vpop.eup %1942 }
 0x2a7   :  { %v549_v14 = vmul.f32 0.5, %v1943_v13  ;;  %v466_v15 = vadd.f32 0.5, %v465_v12 }
 0x2a9   :  { %1795 = vmatmul.mubr.msk.f32.vlgmr.msra.gmra.mxu1 %vm131_vm2, %v466_v15  ;;  %v550_v17 = vadd.f32 0.5, %v549_v14 }
 0x2aa   :  { %1809 = vmatpush3.msra.mxu1 %v2103_v34  ;;  %1816 = vmatprep.mubr.msk.f32.mxu1 %vm1975_vm0, %v1974_v1 }
 0x2ab   :  { %1806 = vmatmul.mubr.msk.f32.vlgmr.msra.gmra.mxu0 %vm131_vm2, %v550_v17  ;;  %1810 = vmatprep.subr.mxu1 %v1974_v1 }
 0x2ac   :  { %1811 = vmatpush3.msra.mxu1 %v2110_v35  ;;  %1820 = vmatpush3.msra.mxu0 %v2029_v7 }
 0x2ad   :  { %1812 = vmatprep.subr.mxu1 %v1974_v1  ;;  %1821 = vmatprep.subr.mxu0 %v1974_v1 }
 0x2ae   :  { %1813 = vmatpush3.msra.mxu1 %v2117_v36  ;;  %1822 = vmatpush3.msra.mxu0 %v2027_v6 }
 0x2af   :  { %1814 = vmatprep.subr.mxu1 %v1974_v1  ;;  %1823 = vmatprep.subr.mxu0 %v1974_v1 }
 0x2b0   :  { %1815 = vmatpush3.msra.mxu1 %v2124_v37  ;;  %1824 = vmatpush3.msra.mxu0 %v2040_v11 }
 0x2b1   :  { %1825 = vmatprep.subr.mxu0 %v1974_v1  ;;  %1827 = vmatprep.mubr.msk.f32.mxu0 %vm1975_vm0, %v1974_v1 }
 0x2b2   :  { %1826 = vmatpush3.msra.mxu0 %v2051_v16  ;;  %1830 = vmatprep.subr.mxu1 %v1974_v1 }
 0x2b3   :  { %1841 = vmatprep.subr.mxu0 %v1974_v1 }
 0x369   :  { %v536_v22 = vpop.f32.mrf.mxu1 }
 0x36a   :  { %v537_v24 = vadd.f32 %v2184_v19, %v536_v22 }
 0x36b   :  { %v1796_v28 = vpop.f32.mrf.mxu1  ;;  %v620_v29 = vpop.f32.mrf.mxu0 }
 0x36c   :  { %v1570_v31 = vrot.slane %v537_v24, 6  ;;  %v625_v20 = vadd.f32 %v624_v25, %v620_v29  ;;  %v709_v32 = vadd.f32 %v707_v26, %v620_v29  ;;  %v1043_v24 = vrot.slane %v2218_v46, 2  ;;  %v958_v29 = vpop.permute.xlu0 %957 }
 0x36d   :  { %v1807_v38 = vpop.f32.mrf.mxu0  ;;  %v1039_v28 = vrot.slane %v2081_v21, 2 }
 0x36e   :  { %v1587_v39 = vsel %vm1558_vm3, %v369_v30, %v1570_v31  ;;  %v710_v40 = vadd.f32 %v709_v32, %v624_v25  ;;  %v629_v41 = vadd.f32 %v627_v27, %v625_v20  ;;  %1125 = vrot.lane.b32.xlu1 %v1043_v24, %s1976_s3 }
 0x370   :  { %v713_v42 = vadd.f32 %v711_v18, %v710_v40  ;;  %v630_v43 = vmul.f32 0.5, %v629_v41  ;;  %v1544_v44 = vrot.slane %v629_v41, 4 }
 0x372   :  { %v714_v45 = vmul.f32 0.5, %v713_v42  ;;  %1944 = vtanh.f32 %v630_v43  ;;  %v1561_v47 = vsel %vm1560_vm4, %v1559_v23, %v1544_v44  ;;  %v791_v57 = vmul.f32 0.9, %v713_v42 }
 0x374   :  { %1946 = vtanh.f32 %v714_v45 }
 0x37f   :  { %v1945_v48 = vpop.eup %1944 }
 0x380   :  { %v632_v49 = vmul.f32 0.5, %v1945_v48 }
 0x381   :  { %v1947_v50 = vpop.eup %1946 }
 0x382   :  { %v716_v51 = vmul.f32 0.5, %v1947_v50  ;;  %v633_v52 = vadd.f32 0.5, %v632_v49 }
 0x384   :  { %1817 = vmatmul.mubr.msk.f32.vlgmr.msra.gmra.mxu1 %vm131_vm2, %v633_v52  ;;  %v717_v53 = vadd.f32 0.5, %v716_v51  ;;  %v2288_v52 = vpop.permute.xlu0 %1292 }
 0x385   :  { %1831 = vmatpush3.msra.mxu1 %v2103_v34  ;;  %1838 = vmatprep.mubr.msk.f32.mxu1 %vm1975_vm0, %v1974_v1 }
 0x386   :  { %1828 = vmatmul.mubr.msk.f32.vlgmr.msra.gmra.mxu0 %vm131_vm2, %v717_v53  ;;  %1832 = vmatprep.subr.mxu1 %v1974_v1 }
 0x387   :  { %1833 = vmatpush3.msra.mxu1 %v2110_v35  ;;  %1842 = vmatpush3.msra.mxu0 %v2029_v7 }
 0x388   :  { %1834 = vmatprep.subr.mxu1 %v1974_v1  ;;  %1843 = vmatprep.subr.mxu0 %v1974_v1 }
 0x389   :  { %1835 = vmatpush3.msra.mxu1 %v2117_v36  ;;  %1844 = vmatpush3.msra.mxu0 %v2027_v6 }
 0x38a   :  { %1836 = vmatprep.subr.mxu1 %v1974_v1  ;;  %1845 = vmatprep.subr.mxu0 %v1974_v1 }
 0x38b   :  { %1837 = vmatpush3.msra.mxu1 %v2124_v37  ;;  %1846 = vmatpush3.msra.mxu0 %v2040_v11 }
 0x38c   :  { %1847 = vmatprep.subr.mxu0 %v1974_v1  ;;  %1849 = vmatprep.mubr.msk.f32.mxu0 %vm1975_vm0, %v1974_v1 }
 0x38d   :  { %1848 = vmatpush3.msra.mxu0 %v2051_v16  ;;  %1852 = vmatprep.subr.mxu1 %v1974_v1 }
 0x38e   :  { %1863 = vmatprep.subr.mxu0 %v1974_v1 }
 0x444   :  { %v703_v55 = vpop.f32.mrf.mxu1 }
 0x445   :  { %v704_v56 = vadd.f32 %v2184_v19, %v703_v55 }
 0x446   :  { %v1818_v59 = vpop.f32.mrf.mxu1  ;;  %v787_v60 = vpop.f32.mrf.mxu0 }
 0x447   :  { %v1573_v61 = vrot.slane %v704_v56, 4  ;;  %v792_v62 = vadd.f32 %v791_v57, %v787_v60  ;;  %v874_v63 = vadd.f32 %v2081_v21, %v787_v60 }
 0x448   :  { %v1829_v0 = vpop.f32.mrf.mxu0 }
 0x449   :  { %v875_v2 = vadd.f32 %v874_v63, %v791_v57  ;;  %v796_v3 = vadd.f32 %v794_v58, %v792_v62  ;;  %v1588_v4 = vsel %vm1560_vm4, %v1587_v39, %v1573_v61  ;;  %v1206_v61 = vrot.slane %v2081_v21, 4  ;;  %v1126_v62 = vpop.permute.xlu1 %1125 }
 0x44b   :  { %v876_v5 = vadd.f32 %v875_v2, %v2218_v46  ;;  %v797_v8 = vmul.f32 0.5, %v796_v3  ;;  %v1547_v9 = vrot.slane %v796_v3, 2 }
 0x44d   :  { %v877_v10 = vmul.f32 0.5, %v876_v5  ;;  %1948 = vtanh.f32 %v797_v8  ;;  %v1563_v12 = vsel %vm1562_vm5, %v1561_v47, %v1547_v9  ;;  %v954_v27 = vmul.f32 0.9, %v876_v5 }
 0x44e   :  { %1567 = vst.msk [vmem:[%s2361_s6] sm:$0xff] %vm131_vm2, %v1563_v12 }
 0x44f   :  { %1950 = vtanh.f32 %v877_v10 }
 0x45a   :  { %v1949_v13 = vpop.eup %1948 }
 0x45b   :  { %v799_v14 = vmul.f32 0.5, %v1949_v13 }
 0x45c   :  { %v1951_v15 = vpop.eup %1950 }
 0x45d   :  { %v879_v17 = vmul.f32 0.5, %v1951_v15  ;;  %v800_v18 = vadd.f32 0.5, %v799_v14 }
 0x45f   :  { %1839 = vmatmul.mubr.msk.f32.vlgmr.msra.gmra.mxu1 %vm131_vm2, %v800_v18  ;;  %v880_v22 = vadd.f32 0.5, %v879_v17 }
 0x460   :  { %1853 = vmatpush3.msra.mxu1 %v2103_v34  ;;  %1860 = vmatprep.mubr.msk.f32.mxu1 %vm1975_vm0, %v1974_v1 }
 0x461   :  { %1850 = vmatmul.mubr.msk.f32.vlgmr.msra.gmra.mxu0 %vm131_vm2, %v880_v22  ;;  %1854 = vmatprep.subr.mxu1 %v1974_v1 }
 0x462   :  { %1855 = vmatpush3.msra.mxu1 %v2110_v35  ;;  %1864 = vmatpush3.msra.mxu0 %v2029_v7 }
 0x463   :  { %1856 = vmatprep.subr.mxu1 %v1974_v1  ;;  %1865 = vmatprep.subr.mxu0 %v1974_v1 }
 0x464   :  { %1857 = vmatpush3.msra.mxu1 %v2117_v36  ;;  %1866 = vmatpush3.msra.mxu0 %v2027_v6 }
 0x465   :  { %1858 = vmatprep.subr.mxu1 %v1974_v1  ;;  %1867 = vmatprep.subr.mxu0 %v1974_v1 }
 0x466   :  { %1859 = vmatpush3.msra.mxu1 %v2124_v37  ;;  %1868 = vmatpush3.msra.mxu0 %v2040_v11 }
 0x467   :  { %1869 = vmatprep.subr.mxu0 %v1974_v1  ;;  %1871 = vmatprep.mubr.msk.f32.mxu0 %vm1975_vm0, %v1974_v1 }
 0x468   :  { %1870 = vmatpush3.msra.mxu0 %v2051_v16  ;;  %1874 = vmatprep.subr.mxu1 %v1974_v1 }
 0x469   :  { %1885 = vmatprep.subr.mxu0 %v1974_v1 }
 0x51f   :  { %v870_v25 = vpop.f32.mrf.mxu1 }
 0x520   :  { %v871_v26 = vadd.f32 %v2184_v19, %v870_v25 }
 0x521   :  { %v1840_v30 = vpop.f32.mrf.mxu1  ;;  %v950_v31 = vpop.f32.mrf.mxu0 }
 0x522   :  { %v1576_v20 = vrot.slane %v871_v26, 2  ;;  %v955_v32 = vadd.f32 %v954_v27, %v950_v31  ;;  %v1041_v33 = vadd.f32 %v1039_v28, %v950_v31 }
 0x523   :  { %v1851_v38 = vpop.f32.mrf.mxu0 }
 0x524   :  { %v1042_v39 = vadd.f32 %v1041_v33, %v954_v27  ;;  %v2261_v40 = vadd.f32 %v958_v29, %v955_v32  ;;  %v1589_v41 = vsel %vm1562_vm5, %v1588_v4, %v1576_v20 }
 0x525   :  { %v1594_v42 = vsel %vm1593_vm6, %v1589_v41, -inf }
 0x526   :  { %v1045_v43 = vadd.f32 %v1043_v24, %v1042_v39  ;;  %v961_v44 = vmul.f32 0.5, %v2261_v40  ;;  %1595 = vmax.xlane.f32.xlu0 %v1594_v42 }
 0x528   :  { %v1046_v23 = vmul.f32 0.5, %v1045_v43  ;;  %1952 = vtanh.f32 %v961_v44  ;;  %v1123_v60 = vmul.f32 0.9, %v1045_v43 }
 0x52a   :  { %1954 = vtanh.f32 %v1046_v23 }
 0x535   :  { %v1953_v45 = vpop.eup %1952 }
 0x536   :  { %v963_v47 = vmul.f32 0.5, %v1953_v45 }
 0x537   :  { %v1955_v48 = vpop.eup %1954 }
 0x538   :  { %v1048_v49 = vmul.f32 0.5, %v1955_v48  ;;  %v964_v50 = vadd.f32 0.5, %v963_v47 }
 0x53a   :  { %1861 = vmatmul.mubr.msk.f32.vlgmr.msra.gmra.mxu1 %vm131_vm2, %v964_v50  ;;  %v1049_v51 = vadd.f32 0.5, %v1048_v49 }
 0x53b   :  { %1875 = vmatpush3.msra.mxu1 %v2103_v34  ;;  %1882 = vmatprep.mubr.msk.f32.mxu1 %vm1975_vm0, %v1974_v1 }
 0x53c   :  { %1872 = vmatmul.mubr.msk.f32.vlgmr.msra.gmra.mxu0 %vm131_vm2, %v1049_v51  ;;  %1876 = vmatprep.subr.mxu1 %v1974_v1 }
 0x53d   :  { %1877 = vmatpush3.msra.mxu1 %v2110_v35  ;;  %1886 = vmatpush3.msra.mxu0 %v2029_v7 }
 0x53e   :  { %1878 = vmatprep.subr.mxu1 %v1974_v1  ;;  %1887 = vmatprep.subr.mxu0 %v1974_v1 }
 0x53f   :  { %1879 = vmatpush3.msra.mxu1 %v2117_v36  ;;  %1888 = vmatpush3.msra.mxu0 %v2027_v6 }
 0x540   :  { %1880 = vmatprep.subr.mxu1 %v1974_v1  ;;  %1889 = vmatprep.subr.mxu0 %v1974_v1 }
 0x541   :  { %1881 = vmatpush3.msra.mxu1 %v2124_v37  ;;  %1890 = vmatpush3.msra.mxu0 %v2040_v11 }
 0x542   :  { %1891 = vmatprep.subr.mxu0 %v1974_v1  ;;  %1893 = vmatprep.mubr.msk.f32.mxu0 %vm1975_vm0, %v1974_v1 }
 0x543   :  { %1892 = vmatpush3.msra.mxu0 %v2051_v16  ;;  %1896 = vmatprep.subr.mxu1 %v1974_v1 }
 0x544   :  { %1907 = vmatprep.subr.mxu0 %v1974_v1 }
 0x5af   :  { %v1596_v53 = vpop.xlane.xlu0 %1595 }
 0x5b0   :  { %v1600_v55 = vsub.f32 %v1589_v41, %v1596_v53 }
 0x5b2   :  { %v1602_v56 = vmul.f32 1.442695, %v1600_v55 }
 0x5b4   :  { %1956 = vpow2.f32 %v1602_v56 }
 0x5c1   :  { %v1957_v57 = vpop.eup %1956 }
 0x5c2   :  { %v1606_v58 = vsel %vm1593_vm6, %v1957_v57, 0.0 }
 0x5c3   :  { %1607 = vadd.xlane.f32.xlu0 %v1606_v58 }
 0x5fa   :  { %v1034_v59 = vpop.f32.mrf.mxu1 }
 0x5fb   :  { %v1035_v29 = vadd.f32 %v2184_v19, %v1034_v59 }
 0x5fc   :  { %v1862_v63 = vpop.f32.mrf.mxu1  ;;  %v1119_v0 = vpop.f32.mrf.mxu0 }
 0x5fd   :  { %v1124_v2 = vadd.f32 %v1123_v60, %v1119_v0  ;;  %v1208_v3 = vadd.f32 %v1206_v61, %v1119_v0 }
 0x5fe   :  { %v1873_v4 = vpop.f32.mrf.mxu0 }
 0x5ff   :  { %v1209_v5 = vadd.f32 %v1208_v3, %v1123_v60  ;;  %v1128_v8 = vadd.f32 %v1126_v62, %v1124_v2 }
 0x601   :  { %v1212_v9 = vadd.f32 %v1210_v54, %v1209_v5  ;;  %v1129_v10 = vmul.f32 0.5, %v1128_v8  ;;  %v1377_v54 = vrot.slane %v2218_v46, 6  ;;  %v1550_v20 = vrot.slane %v1128_v8, 6 }
 0x603   :  { %v1213_v12 = vmul.f32 0.5, %v1212_v9  ;;  %1958 = vtanh.f32 %v1129_v10  ;;  %1459 = vrot.lane.b32.xlu1 %v1377_v54, %s1976_s3  ;;  %v1290_v26 = vmul.f32 0.9, %v1212_v9 }
 0x605   :  { %1960 = vtanh.f32 %v1213_v12 }
 0x610   :  { %v1959_v13 = vpop.eup %1958 }
 0x611   :  { %v1131_v14 = vmul.f32 0.5, %v1959_v13 }
 0x612   :  { %v1961_v15 = vpop.eup %1960 }
 0x613   :  { %v1215_v17 = vmul.f32 0.5, %v1961_v15  ;;  %v1132_v18 = vadd.f32 0.5, %v1131_v14 }
 0x615   :  { %1883 = vmatmul.mubr.msk.f32.vlgmr.msra.gmra.mxu1 %vm131_vm2, %v1132_v18  ;;  %v1216_v22 = vadd.f32 0.5, %v1215_v17 }
 0x616   :  { %1897 = vmatpush3.msra.mxu1 %v2103_v34  ;;  %1904 = vmatprep.mubr.msk.f32.mxu1 %vm1975_vm0, %v1974_v1 }
 0x617   :  { %1894 = vmatmul.mubr.msk.f32.vlgmr.msra.gmra.mxu0 %vm131_vm2, %v1216_v22  ;;  %1898 = vmatprep.subr.mxu1 %v1974_v1 }
 0x618   :  { %1899 = vmatpush3.msra.mxu1 %v2110_v35  ;;  %1908 = vmatpush3.msra.mxu0 %v2029_v7 }
 0x619   :  { %1900 = vmatprep.subr.mxu1 %v1974_v1  ;;  %1909 = vmatprep.subr.mxu0 %v1974_v1 }
 0x61a   :  { %1901 = vmatpush3.msra.mxu1 %v2117_v36  ;;  %1910 = vmatpush3.msra.mxu0 %v2027_v6 }
 0x61b   :  { %1902 = vmatprep.subr.mxu1 %v1974_v1  ;;  %1911 = vmatprep.subr.mxu0 %v1974_v1 }
 0x61c   :  { %1903 = vmatpush3.msra.mxu1 %v2124_v37  ;;  %1912 = vmatpush3.msra.mxu0 %v2040_v11 }
 0x61d   :  { %1913 = vmatprep.subr.mxu0 %v1974_v1  ;;  %1915 = vmatprep.mubr.msk.f32.mxu0 %vm1975_vm0, %v1974_v1 }
 0x61e   :  { %1914 = vmatpush3.msra.mxu0 %v2051_v16  ;;  %1918 = vmatprep.subr.mxu1 %v1974_v1  ;;  %v1373_v16 = vrot.slane %v2081_v21, 6  ;;  %v1564_v21 = vsel %vm1558_vm3, %v2261_v40, %v1550_v20 }
 0x64c   :  { %v1608_v7 = vpop.xlane.xlu0 %1607 }
 0x64d   :  { %1962 = vrcp.f32 %v1608_v7 }
 0x65a   :  { %v1963_v6 = vpop.eup %1962 }
 0x65b   :  { %v1613_v24 = vmul.f32 %v1963_v6, %v1957_v57 }
 0x65d   :  { %1616 = vst.msk [vmem:[%s2362_s5] sm:$0xff] %vm1593_vm6, %v1613_v24 }
 0x675   :  { %v1460_v53 = vpop.permute.xlu1 %1459 }
 0x6d5   :  { %v1202_v11 = vpop.f32.mrf.mxu1 }
 0x6d6   :  { %v1203_v25 = vadd.f32 %v2184_v19, %v1202_v11 }
 0x6d7   :  { %v1884_v27 = vpop.f32.mrf.mxu1  ;;  %v1286_v28 = vpop.f32.mrf.mxu0 }
 0x6d8   :  { %v1579_v30 = vrot.slane %v1203_v25, 6  ;;  %v1291_v46 = vadd.f32 %v1290_v26, %v1286_v28  ;;  %v1375_v31 = vadd.f32 %v1373_v16, %v1286_v28 }
 0x6d9   :  { %v1895_v32 = vpop.f32.mrf.mxu0 }
 0x6da   :  { %v1590_v33 = vsel %vm1558_vm3, %v1035_v29, %v1579_v30  ;;  %v1295_v38 = vadd.f32 %v2288_v52, %v1291_v46  ;;  %v1376_v39 = vadd.f32 %v1375_v31, %v1290_v26 }
 0x6dc   :  { %v1296_v41 = vmul.f32 0.5, %v1295_v38  ;;  %v1379_v42 = vadd.f32 %v1377_v54, %v1376_v39  ;;  %v1553_v43 = vrot.slane %v1295_v38, 4 }
 0x6de   :  { %1964 = vtanh.f32 %v1296_v41  ;;  %v1380_v44 = vmul.f32 0.5, %v1379_v42  ;;  %v1565_v23 = vsel %vm1560_vm4, %v1564_v21, %v1553_v43  ;;  %v1457_v52 = vmul.f32 0.9, %v1379_v42 }
 0x6e0   :  { %1966 = vtanh.f32 %v1380_v44 }
 0x6eb   :  { %v1965_v45 = vpop.eup %1964 }
 0x6ec   :  { %v1298_v47 = vmul.f32 0.5, %v1965_v45 }
 0x6ed   :  { %v1967_v48 = vpop.eup %1966 }
 0x6ee   :  { %v1299_v49 = vadd.f32 0.5, %v1298_v47  ;;  %v1382_v50 = vmul.f32 0.5, %v1967_v48 }
 0x6f0   :  { %1905 = vmatmul.mubr.msk.f32.vlgmr.msra.gmra.mxu1 %vm131_vm2, %v1299_v49  ;;  %v1383_v51 = vadd.f32 0.5, %v1382_v50 }
 0x6f1   :  { %1919 = vmatpush3.msra.mxu1 %v2103_v34  ;;  %1926 = vmatprep.mubr.msk.f32.mxu1 %vm1975_vm0, %v1974_v1 }
 0x6f2   :  { %1916 = vmatmul.mubr.msk.f32.vlgmr.msra.gmra.mxu0 %vm131_vm2, %v1383_v51  ;;  %1920 = vmatprep.subr.mxu1 %v1974_v1 }
 0x6f3   :  { %1921 = vmatpush3.msra.mxu1 %v2110_v35 }
 0x6f4   :  { %1922 = vmatprep.subr.mxu1 %v1974_v1 }
 0x6f5   :  { %1923 = vmatpush3.msra.mxu1 %v2117_v36 }
 0x6f6   :  { %1924 = vmatprep.subr.mxu1 %v1974_v1 }
 0x6f7   :  { %1925 = vmatpush3.msra.mxu1 %v2124_v37 }
 0x7b0   :  { %v1369_v40 = vpop.f32.mrf.mxu1 }
 0x7b1   :  { %v1370_v34 = vadd.f32 %v2184_v19, %v1369_v40 }
 0x7b2   :  { %v1906_v55 = vpop.f32.mrf.mxu1  ;;  %v1453_v56 = vpop.f32.mrf.mxu0 }
 0x7b3   :  { %v1582_v57 = vrot.slane %v1370_v34, 4  ;;  %v1458_v58 = vadd.f32 %v1457_v52, %v1453_v56 }
 0x7b4   :  { %v1917_v59 = vpop.f32.mrf.mxu0 }
 0x7b5   :  { %v1462_v60 = vadd.f32 %v1460_v53, %v1458_v58  ;;  %v1591_v35 = vsel %vm1560_vm4, %v1590_v33, %v1582_v57 }
 0x7b7   :  { %v1463_v61 = vmul.f32 0.5, %v1462_v60  ;;  %v1556_v62 = vrot.slane %v1462_v60, 2 }
 0x7b9   :  { %1968 = vtanh.f32 %v1463_v61  ;;  %v1566_v1 = vsel %vm1562_vm5, %v1565_v23, %v1556_v62 }
 0x7ba   :  { %1568 = vst.msk [vmem:[%s2361_s6 + $0x8] sm:$0xff] %vm131_vm2, %v1566_v1 }
 0x7c6   :  { %v1969_v36 = vpop.eup %1968 }
 0x7c7   :  { %v1465_v37 = vmul.f32 0.5, %v1969_v36 }
 0x7c9   :  { %v1466_v63 = vadd.f32 0.5, %v1465_v37 }
 0x7cb   :  { %1927 = vmatmul.mubr.msk.f32.vlgmr.msra.gmra.mxu1 %vm131_vm2, %v1466_v63 }
 0x88b   :  { %v1536_v0 = vpop.f32.mrf.mxu1 }
 0x88c   :  { %v1537_v2 = vadd.f32 %v2184_v19, %v1536_v0 }
 0x88d   :  { %v1928_v3 = vpop.f32.mrf.mxu1 }
 0x88e   :  { %v1585_v4 = vrot.slane %v1537_v2, 2 }
 0x890   :  { %v1592_v5 = vsel %vm1562_vm5, %v1591_v35, %v1585_v4 }
 0x891   :  { %v1597_v8 = vsel %vm1593_vm6, %v1592_v5, -inf }
 0x892   :  { %1598 = vmax.xlane.f32.xlu1 %v1597_v8 }
 0x91b   :  { %v1599_v9 = vpop.xlane.xlu1 %1598 }
 0x91c   :  { %v1601_v10 = vsub.f32 %v1592_v5, %v1599_v9 }
 0x91e   :  { %v1604_v12 = vmul.f32 1.442695, %v1601_v10 }
 0x920   :  { %1970 = vpow2.f32 %v1604_v12 }
 0x92d   :  { %v1971_v13 = vpop.eup %1970 }
 0x92e   :  { %v1609_v14 = vsel %vm1593_vm6, %v1971_v13, 0.0 }
 0x92f   :  { %1610 = vadd.xlane.f32.xlu0 %v1609_v14 }
 0x9b8   :  { %v1611_v15 = vpop.xlane.xlu0 %1610 }
 0x9b9   :  { %1972 = vrcp.f32 %v1611_v15 }
 0x9c6   :  { %v1973_v17 = vpop.eup %1972 }
 0x9c7   :  { %v1615_v18 = vmul.f32 %v1973_v17, %v1971_v13 }
 0x9c9   :  { %1617 = vst.msk [vmem:[%s2362_s5 + $0x8] sm:$0xff] %vm1593_vm6, %v1615_v18 }

</bundles_post_ra>
